<compile_context>
chip_gen: v7x
topology: tpu7x:2x2x1
jax: 0.10.0
libtpu: 0.0.40
codegen_flags: <defaults>
</compile_context>

<pallas_src>
import functools

import jax
import jax.numpy as jnp
from jax.experimental import pallas as pl
from jax.experimental.pallas import tpu as pltpu


def _global_max_pool1d_kernel(x_ref, o_ref, acc_ref, *, length, tl,
                              mask_last_l, single_l_block, min_val):
    """x_ref: (TR, TL) tile of the flattened (R=N*C, L) input.
    o_ref:  (TR, 1) output tile (resident in VMEM across the L grid axis).
    acc_ref:(TR, 128) running-max scratch (used only when L is tiled).
    Grid = (row-blocks, L-blocks); L is the innermost "arbitrary" reduction axis.
    """
    x = x_ref[...]

    if single_l_block:
        # Whole L fits in one tile (no L padding): single cross-lane reduce + store.
        o_ref[...] = jnp.max(x, axis=-1, keepdims=True).astype(o_ref.dtype)
        return

    li = pl.program_id(1)
    last = pl.num_programs(1) - 1

    def fold(tile):
        # VPU-only fold of (TR, TL) -> (TR, 128): cheap per-step work; the XLU
        # lane-tree reduce is deferred to the last L step (once per output block).
        acc = tile[:, 0:128]
        for k in range(1, tl // 128):          # tl is a multiple of 128 here
            acc = jnp.maximum(acc, tile[:, k * 128:(k + 1) * 128])
        return acc

    def accumulate(tile):
        step = fold(tile)

        @pl.when(li == 0)
        def _():
            acc_ref[...] = step                # first step writes directly (no init fill)

        @pl.when(li != 0)
        def _():
            acc_ref[...] = jnp.maximum(acc_ref[...], step)

    if mask_last_l:
        # Steady state stays mask-free; only the ragged final L tile pays for the
        # iota / compare / select so boundary padding can never win the max.
        @pl.when(li != last)
        def _():
            accumulate(x)

        @pl.when(li == last)
        def _():
            lane = jax.lax.broadcasted_iota(jnp.int32, x.shape, 1)
            valid = (li * tl + lane) < length
            accumulate(jnp.where(valid, x, jnp.asarray(min_val, x.dtype)))
    else:
        accumulate(x)

    @pl.when(li == last)
    def _():
        o_ref[...] = jnp.max(acc_ref[...], axis=-1, keepdims=True).astype(o_ref.dtype)


def global_max_pool1d(x: jax.Array, *, block_bytes: int | None = None) -> jax.Array:
    """Equivalent of F.max_pool1d(x, kernel_size=x.shape[2]) for NCL input."""
    n, c, l = x.shape
    dtype = x.dtype
    itemsize = jnp.dtype(dtype).itemsize

    if jnp.issubdtype(dtype, jnp.floating):
        min_val = float("-inf")
    else:
        min_val = int(jnp.iinfo(dtype).min)

    # Flatten to (R, L): contiguous, free reshape; removes ragged-C padded DMA and
    # gives one large parallel row axis that pipelines / splits across cores cleanly.
    r = n * c
    x2d = x.reshape(r, l)

    # --- Tile selection (op is purely HBM-bandwidth bound) --------------------
    if block_bytes is None:
        try:
            vmem_cap = pltpu.get_tpu_info().vmem_capacity_bytes
        except Exception:
            vmem_cap = 64 * 1024 * 1024        # conservative (v7x-sized) fallback
        # 16 MiB tiles on 128-MiB-VMEM parts (v5e/v6e); 8 MiB on v7x (64 MiB VMEM).
        block_bytes = 16 * 1024 * 1024 if vmem_cap >= 128 * 1024 * 1024 else 8 * 1024 * 1024
    block_bytes = max(block_bytes, 64 * 1024)
    vmem_limit = max(32 * 1024 * 1024, 4 * block_bytes + (1 << 20))

    # Lane axis (L): whole length when <= 2048 (single pass, no mask), otherwise
    # near-equal L tiles that are multiples of 128 lanes.
    if l <= 2048:
        tl = l
    else:
        n_l = pl.cdiv(l, 2048)
        tl = pl.cdiv(pl.cdiv(l, n_l), 128) * 128

    # Row axis: as many rows per step as the VMEM budget allows, rounded to the
    # dtype's sublane tile so input blocks stay layout-aligned.
    sublane = {4: 8, 2: 16, 1: 32}.get(itemsize, 8)
    row_bytes = tl * itemsize
    tr_cap = max(sublane, (block_bytes // row_bytes) // sublane * sublane)
    tr = r if r <= tr_cap else tr_cap

    num_l_blocks = pl.cdiv(l, tl)
    grid = (pl.cdiv(r, tr), num_l_blocks)
    single_l_block = num_l_blocks == 1
    mask_last_l = (not single_l_block) and (l % tl != 0)

    kernel = functools.partial(
        _global_max_pool1d_kernel,
        length=l, tl=tl, mask_last_l=mask_last_l,
        single_l_block=single_l_block, min_val=min_val,
    )

    out2d = pl.pallas_call(
        kernel,
        out_shape=jax.ShapeDtypeStruct((r, 1), dtype),
        grid_spec=pltpu.PrefetchScalarGridSpec(
            num_scalar_prefetch=0,
            grid=grid,
            in_specs=[pl.BlockSpec((tr, tl), lambda ri, li: (ri, li))],
            out_specs=pl.BlockSpec((tr, 1), lambda ri, li: (ri, 0)),
            scratch_shapes=[pltpu.VMEM((tr, 128), dtype)],
        ),
        compiler_params=pltpu.CompilerParams(
            dimension_semantics=("parallel", "arbitrary"),
            vmem_limit_bytes=vmem_limit,
        ),
        cost_estimate=pl.CostEstimate(
            flops=r * l,
            transcendentals=0,
            bytes_accessed=r * l * itemsize + r * itemsize,
        ),
    )(x2d)
    return out2d.reshape(n, c, 1)


if __name__ == "__main__":
    key = jax.random.PRNGKey(0)

    # 1) Small shape matching the PyTorch module's typical use (textCNN pooling).
    batch, channels, length = 2, 4, 16
    x = jax.random.normal(key, (batch, channels, length), dtype=jnp.float32)
    out = jax.block_until_ready(global_max_pool1d(x))
    ref = jnp.max(x, axis=2, keepdims=True)
    assert out.shape == (batch, channels, 1), out.shape
    assert jnp.allclose(out, ref), "mismatch vs reference (small shape)"

    # 2) Long sequence: exercises the tiled-L reduction path with a ragged last
    #    L tile (masked final step) under automatic tile selection.
    xb = jax.random.normal(jax.random.PRNGKey(1), (2, 256, 5000), dtype=jnp.float32)
    outb = jax.block_until_ready(global_max_pool1d(xb))
    refb = jnp.max(xb, axis=2, keepdims=True)
    assert outb.shape == (2, 256, 1), outb.shape
    assert jnp.allclose(outb, refb), "mismatch vs reference (tiled-L shape)"

    # 3) Forced small blocks: exercises ragged row blocks + tiled/masked L together.
    xc = jax.random.normal(jax.random.PRNGKey(2), (3, 130, 2500), dtype=jnp.float32)
    outc = jax.block_until_ready(global_max_pool1d(xc, block_bytes=256 * 1024))
    refc = jnp.max(xc, axis=2, keepdims=True)
    assert outc.shape == (3, 130, 1), outc.shape
    assert jnp.allclose(outc, refc), "mismatch vs reference (ragged-row shape)"

    print("KERNEL_OK")
</pallas_src>

<mosaic_0001>
module attributes {stable_mosaic.version = 11 : i64} {
  func.func @_global_max_pool1d_kernel(%arg0: i32, %arg1: i32, %arg2: memref<8x16xf32, #tpu.memory_space<vmem>>, %arg3: memref<8x1xf32, #tpu.memory_space<vmem>>, %arg4: memref<8x128xf32, #tpu.memory_space<vmem>>) attributes {dimension_semantics = [#tpu.dimension_semantics<parallel>, #tpu.dimension_semantics<arbitrary>], iteration_bounds = array<i64: 1, 1>, scalar_prefetch = 0 : i64, scratch_operands = 1 : i64, tpu.core_type = #tpu.core_type<tc>, window_params = [{transform_indices = @transform_0, window_bounds = array<i64: 8, 16>}, {transform_indices = @transform_1, window_bounds = array<i64: 8, 1>}]} {
    %c0 = arith.constant 0 : index
    %c0_0 = arith.constant 0 : index
    %0 = vector.load %arg2[%c0, %c0_0] : memref<8x16xf32, #tpu.memory_space<vmem>>, vector<8x16xf32>
    %cst = arith.constant dense<0xFF800000> : vector<8xf32>
    %1 = vector.multi_reduction <maximumf>, %0, %cst [1] : vector<8x16xf32> to vector<8xf32>
    %2 = vector.shape_cast %1 : vector<8xf32> to vector<8x1xf32>
    %c0_1 = arith.constant 0 : index
    %c0_2 = arith.constant 0 : index
    %3 = vector.load %arg3[%c0_1, %c0_2] : memref<8x1xf32, #tpu.memory_space<vmem>>, vector<8x1xf32>
    tpu.vector_store %arg3[%c0_1, %c0_2], %2 {strides = array<i32>} : memref<8x1xf32, #tpu.memory_space<vmem>>, vector<8x1xf32>,
    return
  }
  func.func @transform_0(%arg0: i32, %arg1: i32) -> (i32, i32) {
    %c0_i32 = arith.constant 0 : i32
    return %arg0, %arg1 : i32, i32
  }
  func.func @transform_1(%arg0: i32, %arg1: i32) -> (i32, i32) {
    %c0_i32 = arith.constant 0 : i32
    %c0_i32_0 = arith.constant 0 : i32
    return %arg0, %c0_i32 : i32, i32
  }
}

</mosaic_0001>

<bundles_post_ra>
// kernel: tpu_custom_call.1
= control target key start
LH: loop header
LB: loop body
LE: loop exit
PB: predicated region body
PF: predicated region fallthrough
CT: control target
= control target key end

     0   :  { %6 = vsyncpa [#allocation4], 0  ;;  %s57_s6 = smov [#allocation3]   ;;  %s83_s0 = inlined_call_operand.hbm [shape: f32[8,16], index: 0, kind: input, shape index: {}]   ;;  %s84_s1 = inlined_call_operand.vmem [shape: f32[8,1], index: 1, kind: output, shape index: {}]  }
   0x1   :  { %s13_s7 = sshll.u32 %s57_s6, 4  ;;  %s33_s10 = scalar_lea.hbm %s83_s0, 128  ;;  %s14_s7 = int_to_ptr.vmem [resolvable:$true] %s13_s7 }
   0x2   :  { %p34_p0 = scmp.ne.s32.totalorder %s83_s0, %s33_s10  ;;  %p37_p1 = scmp.lt.u32.totalorder %s33_s10, %s83_s0 }
   0x4   :  { %p39_p2 = pnand %p37_p1, %p34_p0 }
   0x6   :  { %42 = shalt.err (!%p39_p2)
}
   0x7   :  { %s43_s15 = scalar_lea.vmem %s14_s7, 128  ;;  %p48_p4 = scmp.lt.s32.totalorder %s14_s7, %s14_s7 }
   0x8   :  { %p44_p3 = scmp.ne.s32.totalorder %s14_s7, %s43_s15  ;;  %p49_p5 = scmp.lt.s32.totalorder %s43_s15, %s43_s15 }
   0xa   :  { %p50_p6 = por %p49_p5, %p48_p4 }
   0xc   :  { %p51_p7 = pnand %p50_p6, %p44_p3 }
   0xe   :  { %54 = shalt.err (!%p51_p7)
}
   0xf   :  { %16 = dma.hbm_to_vmem [thread:$0]  %s83_s0, 128, %s14_s7, [#allocation4]  }
  0x10   :  { %55 = dma.done.wait [#allocation4], 128  }
  0x11   :  { %56 = vsyncadd [#allocation4], 4294967168  ;;  %vm21_vm0 = vcmask 130048   ;;  %v20_v0 = vld [vmem:[#allocation3] sm:$0xff]  ;;  %vm25_vm1 = vcmask 7168  }
  0x12   :  { %v22_v1 = vsel %vm21_vm0, %v20_v0, -inf }
  0x13   :  { %23 = vmax.xlane.f32.xlu0 %v22_v1 }
  0xa0   :  { %v24_v2 = vpop.xlane.xlu0 %23 }
  0xa1   :  { %26 = vst.msk [vmem:[%s84_s1] sm:$0xff] %vm25_vm1, %v24_v2 }
  0xa2   :  { %31 = vsyncpa [#allocation4], 1 }

</bundles_post_ra>
